<compile_context>
chip_gen: v7x
topology: tpu7x:2x2x1
jax: 0.10.0
libtpu: 0.0.40
codegen_flags: <defaults>
</compile_context>

<pallas_src>
from typing import NamedTuple

import jax
import jax.numpy as jnp
from jax.experimental import pallas as pl
from jax.experimental.pallas import tpu as pltpu


# ---------------------------------------------------------------------------
# Helpers
# ---------------------------------------------------------------------------

def _round_up(n: int, m: int) -> int:
    return ((n + m - 1) // m) * m


def _vmem_budget_bytes() -> int:
    """~75% of per-TensorCore VMEM (48 MiB on v7x, 96 MiB on v5e/v6e)."""
    cap = 64 << 20
    try:
        info = pltpu.get_tpu_info()
        cap = int(getattr(info, "vmem_capacity_bytes", cap))
    except Exception:
        pass
    return (3 * cap) // 4


def _onehot_vmem_bytes(vu, vi, d, tile_b, tbl_itemsize):
    """Rough VMEM estimate for the resident one-hot path (drives dispatch)."""
    tables = (vu + vi) * d * tbl_itemsize              # resident tables (1 copy)
    sel = (vu + vi) * tile_b * (4 + tbl_itemsize)      # iota/compare + sel temps
    gathered = 3 * d * tile_b * 4                      # u, v, u*v f32 tiles
    small = 2 * 3 * 2 * tile_b * 4                     # double-buffered id/out tiles
    return tables + sel + gathered + small


# ---------------------------------------------------------------------------
# One-time table preparation (hoisted out of the forward pass)
# ---------------------------------------------------------------------------

class MFTables(NamedTuple):
    u_t: jax.Array      # (D, Vu_pad) transposed user table, vocab padded to 8
    i_t: jax.Array      # (D, Vi_pad) transposed item table
    num_users: int
    num_items: int


def prepare_mf_tables(user_emb, item_emb, table_dtype=jnp.bfloat16) -> MFTables:
    """Pad + transpose + cast the embedding tables ONCE.

    bf16 is the default: the one-hot selectors are exactly representable in
    bf16, so the in-kernel gather stays exact up to bf16 table storage while
    the MXU matmul is single-pass.
    """
    num_users, d = user_emb.shape
    num_items, d2 = item_emb.shape
    assert d == d2, "user/item latent dims must match"
    vu = _round_up(num_users, 8)
    vi = _round_up(num_items, 8)
    u_t = jnp.pad(user_emb, ((0, vu - num_users), (0, 0))).astype(table_dtype).T
    i_t = jnp.pad(item_emb, ((0, vi - num_items), (0, 0))).astype(table_dtype).T
    return MFTables(u_t, i_t, num_users, num_items)


# ---------------------------------------------------------------------------
# Path 1: resident tables + one-hot MXU gather (small vocabularies)
# ---------------------------------------------------------------------------

def _mf_onehot_kernel(uid_ref, iid_ref, uT_ref, iT_ref, out_ref):
    # uid/iid : (1, TB) int32 ids for this batch tile (lane-indexed).
    # uT/iT   : (D, Vu) / (D, Vi) VMEM-resident, single-buffered tables.
    # out     : (1, TB) f32, lane-dense (unmasked vst).
    uid = uid_ref[...]
    iid = iid_ref[...]
    vu = uT_ref.shape[1]
    vi = iT_ref.shape[1]
    tb = uid.shape[1]

    # One-hot selectors on the VPU; 0/1 values are exact in the table dtype.
    sel_u = (jax.lax.broadcasted_iota(jnp.int32, (vu, tb), 0) == uid).astype(uT_ref.dtype)
    sel_i = (jax.lax.broadcasted_iota(jnp.int32, (vi, tb), 0) == iid).astype(iT_ref.dtype)

    # Single-pass MXU gather: (D, V) @ (V, TB) -> (D, TB), f32 accumulation.
    # (No precision=HIGHEST; bf16 x bf16 with exact 0/1 selector is exact.)
    u = jnp.dot(uT_ref[...], sel_u, preferred_element_type=jnp.float32)
    v = jnp.dot(iT_ref[...], sel_i, preferred_element_type=jnp.float32)

    # Elementwise product + reduce over the latent dim (sublanes) -> (1, TB).
    out_ref[...] = jnp.sum(u * v, axis=0, keepdims=True)


def mf_forward_onehot(x, tables: MFTables, *, tile_b=None):
    """Resident-table path. x: [B, 2] ids; returns [B] f32 dot products."""
    b = x.shape[0]
    d, vu = tables.u_t.shape
    _, vi = tables.i_t.shape
    budget = _vmem_budget_bytes()

    if tile_b is None:
        # Smaller default batch tile on v7x (64 MiB/TC) than v5e/v6e (128 MiB).
        cap_tb = 256 if budget < (40 << 20) else 512
        tile_b = int(min(cap_tb, max(128, pl.next_power_of_2(b))))
    nt = pl.cdiv(b, tile_b)
    b_pad = nt * tile_b

    ids = x.astype(jnp.int32)
    # Documented contract: out-of-range ids are clamped (nn.Embedding raises).
    uid = jnp.clip(ids[:, 0], 0, tables.num_users - 1)
    iid = jnp.clip(ids[:, 1], 0, tables.num_items - 1)
    pad = b_pad - b
    uid = jnp.pad(uid, (0, pad)).reshape(1, b_pad)     # lane-indexed layout
    iid = jnp.pad(iid, (0, pad)).reshape(1, b_pad)

    cp_kwargs = dict(dimension_semantics=("parallel",))
    est = _onehot_vmem_bytes(vu, vi, d, tile_b, jnp.dtype(tables.u_t.dtype).itemsize)
    if est > (16 << 20):
        cp_kwargs["vmem_limit_bytes"] = int(min(max(2 * est, 32 << 20), budget))

    out = pl.pallas_call(
        _mf_onehot_kernel,
        out_shape=jax.ShapeDtypeStruct((1, b_pad), jnp.float32),
        grid_spec=pltpu.PrefetchScalarGridSpec(
            num_scalar_prefetch=0,
            grid=(nt,),
            in_specs=[
                pl.BlockSpec((1, tile_b), lambda i: (0, i)),       # user id tile
                pl.BlockSpec((1, tile_b), lambda i: (0, i)),       # item id tile
                # Whole-array VMEM operands: copied in once, NOT double-buffered.
                pl.BlockSpec(memory_space=pltpu.MemorySpace.VMEM),
                pl.BlockSpec(memory_space=pltpu.MemorySpace.VMEM),
            ],
            out_specs=pl.BlockSpec((1, tile_b), lambda i: (0, i)),
        ),
        compiler_params=pltpu.CompilerParams(**cp_kwargs),
    )(uid, iid, tables.u_t, tables.i_t)

    return out.reshape(b_pad)[:b]


# ---------------------------------------------------------------------------
# Path 2: HBM row-gather (large vocabularies, exact f32)
# ---------------------------------------------------------------------------

def _mf_gather_kernel(uid_ref, iid_ref, utbl_ref, itbl_ref, out_ref,
                      ubuf, ibuf, sems):
    # uid/iid   : (B_pad,) int32 ids, scalar-prefetched into SMEM.
    # utbl/itbl : (Vu, D) / (Vi, D) embedding tables left in HBM.
    # out       : (TB, 1) f32 output block.
    # ubuf/ibuf : (TB, D) VMEM scratch for the gathered rows.
    # sems      : (2,) DMA semaphores (user / item); all copies are row-sized,
    #             so sequential same-size waits on a shared sem are valid.
    tb = ubuf.shape[0]
    base = pl.program_id(0) * tb

    @pl.loop(0, tb)
    def _start(r):
        u_id = uid_ref[base + r]
        i_id = iid_ref[base + r]
        pltpu.make_async_copy(utbl_ref.at[pl.ds(u_id, 1)],
                              ubuf.at[pl.ds(r, 1)], sems.at[0]).start()
        pltpu.make_async_copy(itbl_ref.at[pl.ds(i_id, 1)],
                              ibuf.at[pl.ds(r, 1)], sems.at[1]).start()

    @pl.loop(0, tb)
    def _wait(r):
        pltpu.make_async_copy(utbl_ref.at[pl.ds(0, 1)],
                              ubuf.at[pl.ds(0, 1)], sems.at[0]).wait()
        pltpu.make_async_copy(itbl_ref.at[pl.ds(0, 1)],
                              ibuf.at[pl.ds(0, 1)], sems.at[1]).wait()

    # TODO(synk): double-buffer the row gather across grid steps (prefetch tile
    # i+1 while computing tile i) if DMA latency shows up as exposed.
    u = ubuf[...].astype(jnp.float32)
    v = ibuf[...].astype(jnp.float32)
    out_ref[...] = jnp.sum(u * v, axis=1, keepdims=True)          # (TB, 1)


def mf_forward_gather(x, user_emb, item_emb, *, tile_b=None):
    """Row-gather path. x: [B, 2] ids; returns [B] f32 dot products."""
    b = x.shape[0]
    num_users, d = user_emb.shape
    num_items, d2 = item_emb.shape
    assert d == d2, "user/item latent dims must match"

    if tile_b is None:
        tile_b = int(min(256, max(128, pl.next_power_of_2(b))))
    tile_b = _round_up(tile_b, 8)
    nt = pl.cdiv(b, tile_b)
    b_pad = nt * tile_b

    ids = x.astype(jnp.int32)
    # Clamp (documented contract): an OOB id must never become an OOB HBM DMA.
    uid = jnp.clip(ids[:, 0], 0, num_users - 1)
    iid = jnp.clip(ids[:, 1], 0, num_items - 1)
    pad = b_pad - b
    uid = jnp.pad(uid, (0, pad))
    iid = jnp.pad(iid, (0, pad))

    out = pl.pallas_call(
        _mf_gather_kernel,
        out_shape=jax.ShapeDtypeStruct((b_pad, 1), jnp.float32),
        grid_spec=pltpu.PrefetchScalarGridSpec(
            num_scalar_prefetch=2,                      # uid, iid -> SMEM
            grid=(nt,),
            in_specs=[
                pl.BlockSpec(memory_space=pl.ANY),      # user table stays in HBM
                pl.BlockSpec(memory_space=pl.ANY),      # item table stays in HBM
            ],
            out_specs=pl.BlockSpec((tile_b, 1), lambda i, u_ids, i_ids: (i, 0)),
            scratch_shapes=[
                pltpu.VMEM((tile_b, d), user_emb.dtype),
                pltpu.VMEM((tile_b, d), item_emb.dtype),
                pltpu.SemaphoreType.DMA((2,)),
            ],
        ),
        compiler_params=pltpu.CompilerParams(dimension_semantics=("parallel",)),
    )(uid, iid, user_emb, item_emb)

    return out.reshape(b_pad)[:b]


# ---------------------------------------------------------------------------
# Dispatcher
# ---------------------------------------------------------------------------

def mf_forward(x, user_emb, item_emb, *, prepared=None, tile_b=None,
               force_gather=False):
    """MF forward: out[b] = <user_emb[x[b,0]], item_emb[x[b,1]]>, shape [B]."""
    num_users, d = user_emb.shape
    num_items, _ = item_emb.shape
    budget = _vmem_budget_bytes()
    vu, vi = _round_up(num_users, 8), _round_up(num_items, 8)
    probe_tb = tile_b or (256 if budget < (40 << 20) else 512)
    est = _onehot_vmem_bytes(vu, vi, d, probe_tb, 2)

    if force_gather or est > budget:
        return mf_forward_gather(x, user_emb, item_emb, tile_b=tile_b)

    if prepared is None:
        # NOTE: callers should hoist/cache prepare_mf_tables() so the full
        # tables are not re-padded / re-transposed on every forward call.
        prepared = prepare_mf_tables(user_emb, item_emb)
    return mf_forward_onehot(x, prepared, tile_b=tile_b)


# ---------------------------------------------------------------------------
# Self-test
# ---------------------------------------------------------------------------

if __name__ == "__main__":
    # Small, deterministic synthetic setup (stand-in for nn.Embedding weights).
    num_users, num_items, latent_dim, batch = 16, 24, 32, 8

    key = jax.random.PRNGKey(0)
    k_u, k_i, k_xu, k_xi = jax.random.split(key, 4)
    user_emb = jax.random.normal(k_u, (num_users, latent_dim), dtype=jnp.float32)
    item_emb = jax.random.normal(k_i, (num_items, latent_dim), dtype=jnp.float32)

    u_ids = jax.random.randint(k_xu, (batch,), 0, num_users, dtype=jnp.int32)
    i_ids = jax.random.randint(k_xi, (batch,), 0, num_items, dtype=jnp.int32)
    x = jnp.stack([u_ids, i_ids], axis=1)          # [B, 2]

    # Plain-JAX references.
    ref_f32 = jnp.sum(user_emb[x[:, 0]] * item_emb[x[:, 1]], axis=1)
    u_b = user_emb.astype(jnp.bfloat16).astype(jnp.float32)
    i_b = item_emb.astype(jnp.bfloat16).astype(jnp.float32)
    ref_bf16 = jnp.sum(u_b[x[:, 0]] * i_b[x[:, 1]], axis=1)

    # Path 1: resident-table one-hot MXU gather (tables prepared once, bf16).
    tables = prepare_mf_tables(user_emb, item_emb)
    out_onehot = jax.block_until_ready(
        mf_forward(x, user_emb, item_emb, prepared=tables))
    assert out_onehot.shape == (batch,)
    # Exact up to bf16 table storage (single-pass MXU matmul, 0/1 selectors).
    assert jnp.allclose(out_onehot, ref_bf16, atol=1e-5, rtol=1e-5)

    # Path 2: HBM row-gather (exact f32), forced to exercise the large-vocab path.
    out_gather = jax.block_until_ready(
        mf_forward(x, user_emb, item_emb, force_gather=True))
    assert out_gather.shape == (batch,)
    assert jnp.allclose(out_gather, ref_f32, atol=1e-4, rtol=1e-5)

    print("KERNEL_OK")
</pallas_src>

<mosaic_0001>
module attributes {stable_mosaic.version = 11 : i64} {
  func.func @_mf_onehot_kernel(%arg0: i32, %arg1: memref<1x128xi32, #tpu.memory_space<vmem>>, %arg2: memref<1x128xi32, #tpu.memory_space<vmem>>, %arg3: memref<32x16xbf16, #tpu.memory_space<vmem>>, %arg4: memref<32x24xbf16, #tpu.memory_space<vmem>>, %arg5: memref<1x128xf32, #tpu.memory_space<vmem>>) attributes {dimension_semantics = [#tpu.dimension_semantics<parallel>], iteration_bounds = array<i64: 1>, scalar_prefetch = 0 : i64, scratch_operands = 0 : i64, tpu.core_type = #tpu.core_type<tc>, window_params = [{transform_indices = @transform_0, window_bounds = array<i64: 1, 128>}, {transform_indices = @transform_1, window_bounds = array<i64: 1, 128>}, {pipeline_mode = #tpu.pipeline_mode<synchronous>, transform_indices = @transform_2, window_bounds = array<i64: 32, 16>}, {pipeline_mode = #tpu.pipeline_mode<synchronous>, transform_indices = @transform_3, window_bounds = array<i64: 32, 24>}, {transform_indices = @transform_4, window_bounds = array<i64: 1, 128>}]} {
    %c0 = arith.constant 0 : index
    %c0_0 = arith.constant 0 : index
    %0 = vector.load %arg1[%c0, %c0_0] : memref<1x128xi32, #tpu.memory_space<vmem>>, vector<1x128xi32>
    %c0_1 = arith.constant 0 : index
    %c0_2 = arith.constant 0 : index
    %1 = vector.load %arg2[%c0_1, %c0_2] : memref<1x128xi32, #tpu.memory_space<vmem>>, vector<1x128xi32>
    %2 = tpu.iota {dimensions = array<i32: 0>} : vector<16x128xi32>
    %3 = vector.broadcast %0 : vector<1x128xi32> to vector<16x128xi32>
    %4 = arith.cmpi eq, %2, %3 : vector<16x128xi32>
    %5 = arith.extui %4 : vector<16x128xi1> to vector<16x128xi32>
    %6 = arith.sitofp %5 : vector<16x128xi32> to vector<16x128xf32>
    %7 = arith.truncf %6 : vector<16x128xf32> to vector<16x128xbf16>
    %8 = tpu.iota {dimensions = array<i32: 0>} : vector<24x128xi32>
    %9 = vector.broadcast %1 : vector<1x128xi32> to vector<24x128xi32>
    %10 = arith.cmpi eq, %8, %9 : vector<24x128xi32>
    %11 = arith.extui %10 : vector<24x128xi1> to vector<24x128xi32>
    %12 = arith.sitofp %11 : vector<24x128xi32> to vector<24x128xf32>
    %13 = arith.truncf %12 : vector<24x128xf32> to vector<24x128xbf16>
    %c0_3 = arith.constant 0 : index
    %c0_4 = arith.constant 0 : index
    %14 = vector.load %arg3[%c0_3, %c0_4] : memref<32x16xbf16, #tpu.memory_space<vmem>>, vector<32x16xbf16>
    %cst = arith.constant dense<0.000000e+00> : vector<32x128xf32>
    %15 = tpu.matmul %14, %7, %cst {dimension_numbers = #tpu.dot_dimension_numbers<[1], [0], [0], [1], [0, 0, 1, 1], [], []>} : vector<32x16xbf16>, vector<16x128xbf16>, vector<32x128xf32> -> vector<32x128xf32>
    %c0_5 = arith.constant 0 : index
    %c0_6 = arith.constant 0 : index
    %16 = vector.load %arg4[%c0_5, %c0_6] : memref<32x24xbf16, #tpu.memory_space<vmem>>, vector<32x24xbf16>
    %cst_7 = arith.constant dense<0.000000e+00> : vector<32x128xf32>
    %17 = tpu.matmul %16, %13, %cst_7 {dimension_numbers = #tpu.dot_dimension_numbers<[1], [0], [0], [1], [0, 0, 1, 1], [], []>} : vector<32x24xbf16>, vector<24x128xbf16>, vector<32x128xf32> -> vector<32x128xf32>
    %18 = arith.mulf %15, %17 : vector<32x128xf32>
    %cst_8 = arith.constant dense<0.000000e+00> : vector<128xf32>
    %19 = vector.multi_reduction <add>, %18, %cst_8 [0] : vector<32x128xf32> to vector<128xf32>
    %20 = vector.shape_cast %19 : vector<128xf32> to vector<1x128xf32>
    %c0_9 = arith.constant 0 : index
    %c0_10 = arith.constant 0 : index
    %21 = vector.load %arg5[%c0_9, %c0_10] : memref<1x128xf32, #tpu.memory_space<vmem>>, vector<1x128xf32>
    tpu.vector_store %arg5[%c0_9, %c0_10], %20 {strides = array<i32>} : memref<1x128xf32, #tpu.memory_space<vmem>>, vector<1x128xf32>,
    return
  }
  func.func @transform_0(%arg0: i32) -> (i32, i32) {
    %c0_i32 = arith.constant 0 : i32
    %c0_i32_0 = arith.constant 0 : i32
    return %c0_i32, %arg0 : i32, i32
  }
  func.func @transform_1(%arg0: i32) -> (i32, i32) {
    %c0_i32 = arith.constant 0 : i32
    %c0_i32_0 = arith.constant 0 : i32
    return %c0_i32, %arg0 : i32, i32
  }
  func.func @transform_2(%arg0: i32) -> (i32, i32) {
    %c0_i32 = arith.constant 0 : i32
    %c0_i32_0 = arith.constant 0 : i32
    %c0_i32_1 = arith.constant 0 : i32
    return %c0_i32, %c0_i32_0 : i32, i32
  }
  func.func @transform_3(%arg0: i32) -> (i32, i32) {
    %c0_i32 = arith.constant 0 : i32
    %c0_i32_0 = arith.constant 0 : i32
    %c0_i32_1 = arith.constant 0 : i32
    return %c0_i32, %c0_i32_0 : i32, i32
  }
  func.func @transform_4(%arg0: i32) -> (i32, i32) {
    %c0_i32 = arith.constant 0 : i32
    %c0_i32_0 = arith.constant 0 : i32
    return %c0_i32, %arg0 : i32, i32
  }
}

</mosaic_0001>

<bundles_post_ra>
// kernel: tpu_custom_call.1
= control target key start
LH: loop header
LB: loop body
LE: loop exit
PB: predicated region body
PF: predicated region fallthrough
CT: control target
= control target key end

     0   :  { %v21_v1 = vlaneseq  ;;  %vm65_vm0 = vcmask 130048   ;;  %vm135_vm3 = vcmask 195584   ;;  %s357_s0 = inlined_call_operand.vmem [shape: s32[1,128], index: 0, kind: input, shape index: {}]   ;;  %s358_s1 = inlined_call_operand.vmem [shape: s32[1,128], index: 1, kind: input, shape index: {}]   ;;  %s359_s2 = inlined_call_operand.vmem [shape: bf16[32,16], index: 2, kind: input, shape index: {}]   ;;  %s360_s3 = inlined_call_operand.vmem [shape: bf16[32,24], index: 3, kind: input, shape index: {}]   ;;  %s361_s4 = inlined_call_operand.hbm [shape: f32[1,128], index: 4, kind: output, shape index: {}]  }
   0x1   :  { %v226_v0 = vld [vmem:[%s358_s1] ss:$0 sm:$0xff] }
   0x2   :  { %v267_v2 = vld [vmem:[%s359_s2] sm:$0xff]   ;;  %v22_v3 = vshrl.u32 %v21_v1, 7 }
   0x3   :  { %v223_v4 = vld [vmem:[%s357_s0] ss:$0 sm:$0xff]  ;;  %251 = vmatprep.mubr.msk.bf16.mxu0 %vm65_vm0, %v267_v2 }
   0x4   :  { %v23_v5 = vadd.s32 8, %v22_v3  ;;  %v35_v6 = vadd.s32 16, %v22_v3  ;;  %vm40_vm1 = vcmp.eq.s32.totalorder %v22_v3, %v226_v0  ;;  %v269_v7 = vld [vmem:[%s360_s3] sm:$0xff]   ;;  %vm28_vm2 = vcmp.eq.s32.totalorder %v22_v3, %v223_v4 }
   0x5   :  { %9 = vsyncpa [#allocation3], 0  ;;  %259 = vmatprep.mubr.msk.bf16.mxu1 %vm135_vm3, %v269_v7  ;;  %v295_v8 = vmov 0.0   ;;  %vm142_vm8 = vcmask 1043456   ;;  %v296_v11 = vmov 1.0|1.0  }
   0x6   :  { %vm41_vm4 = vcmp.eq.s32.totalorder %v23_v5, %v226_v0  ;;  %vm42_vm5 = vcmp.eq.s32.totalorder %v35_v6, %v226_v0  ;;  %vm29_vm6 = vcmp.eq.s32.totalorder %v23_v5, %v223_v4  ;;  %v268_v12 = vld [vmem:[%s359_s2 + $0x8] sm:$0xff]   ;;  %s297_s2 = smov [#allocation2]  }
   0x7   :  { %v229_v9 = vsel %vm42_vm5, 1.0, %v295_v8  ;;  %vm238_vm7 = vmpackc.low %vm41_vm4, %vm40_vm1  ;;  %v270_v14 = vld [vmem:[%s360_s3 + $0x8] sm:$0xff]   ;;  %s215_s3 = sshll.u32 %s297_s2, 4  ;;  %s216_s3 = int_to_ptr.vmem [resolvable:$true] %s215_s3 }
   0x8   :  { %v50_v10 = vpack.c.bf16 %v229_v9, %v229_v9  ;;  %255 = vmatprep.subr.msk.bf16.mxu1 %vm238_vm7, %v296_v11  ;;  %vm232_vm9 = vmpackc.low %vm29_vm6, %vm28_vm2  ;;  %s271_s25 = scalar_lea.vmem %s216_s3, 16  ;;  %s275_s26 = scalar_lea.vmem %s216_s3, 32 }
   0x9   :  { %249 = vmatprep.subr.msk.bf16.mxu0 %vm232_vm9, %v296_v11  ;;  %256 = vmatpush3.bf16.msk.msra.mxu1 %vm238_vm7, %v296_v11  ;;  %p272_p0 = scmp.ne.s32.totalorder %s216_s3, %s271_s25  ;;  %p276_p1 = scmp.lt.s32.totalorder %s216_s3, %s216_s3 }
   0xa   :  { %250 = vmatpush3.bf16.msk.msra.mxu0 %vm232_vm9, %v296_v11  ;;  %263 = vmatprep.subr.msk.bf16.mxu1 %vm142_vm8, %v50_v10  ;;  %v144_v13 = vsel %vm142_vm8, %v50_v10, 0  ;;  %p277_p2 = scmp.lt.s32.totalorder %s275_s26, %s271_s25 }
   0xc   :  { %p278_p3 = por %p277_p2, %p276_p1 }
   0xd   :  { %252 = vmatmul.mubr.msk.bf16.vlgmr.msra.gmra.mrb[0].mxu0 %vm65_vm0, %v268_v12  ;;  %258 = vmatpush3.bf16.msra.mxu1 %v144_v13 }
   0xe   :  { %p279_p4 = pnand %p278_p3, %p272_p0 }
  0x10   :  { %260 = vmatmul.mubr.msk.bf16.vlgmr.msra.gmra.mrb[0].mxu1 %vm135_vm3, %v270_v14 }
  0xe0   :  { %v253_v15 = vpop.f32.mrb[0].mxu0 }
  0xe1   :  { %v106_v16 = vpop.f32.mrb[1].mxu0 }
  0xe2   :  { %v254_v17 = vpop.f32.mrb[2].mxu0 }
  0xe3   :  { %v109_v18 = vpop.f32.mrb[3].mxu0  ;;  %v261_v19 = vpop.f32.mrb[0].mxu1 }
  0xe4   :  { %v197_v20 = vmul.f32 %v261_v19, %v253_v15  ;;  %v180_v21 = vpop.f32.mrb[1].mxu1 }
  0xe5   :  { %v195_v22 = vmul.f32 %v180_v21, %v106_v16  ;;  %v262_v23 = vpop.f32.mrb[2].mxu1 }
  0xe6   :  { %v198_v24 = vmul.f32 %v262_v23, %v254_v17  ;;  %v183_v25 = vpop.f32.mrb[3].mxu1 }
  0xe7   :  { %v196_v26 = vmul.f32 %v183_v25, %v109_v18 }
  0xe9   :  { %v199_v27 = vadd.f32 %v196_v26, %v195_v22 }
  0xeb   :  { %v200_v28 = vadd.f32 %v199_v27, %v197_v20 }
  0xed   :  { %v201_v29 = vadd.f32 %v200_v28, %v198_v24 }
  0xef   :  { %v202_v30 = vrot.slane %v201_v29, 4 }
  0xf1   :  { %v203_v31 = vadd.f32 %v202_v30, %v201_v29 }
  0xf3   :  { %v204_v32 = vrot.slane %v203_v31, 2 }
  0xf5   :  { %v205_v33 = vadd.f32 %v204_v32, %v203_v31 }
  0xf7   :  { %v206_v34 = vrot.slane %v205_v33, 1 }
  0xf9   :  { %v207_v35 = vadd.f32 %v206_v34, %v205_v33 }
  0xfb   :  { %208 = vst [vmem:[#allocation2] sm:$0x1] %v207_v35 }
  0xfc   :  { %282 = shalt.err (!%p279_p4)
}
  0xfd   :  { %s283_s29 = scalar_lea.hbm %s361_s4, 16 }
  0xfe   :  { %p284_p5 = scmp.ne.s32.totalorder %s361_s4, %s283_s29  ;;  %p287_p6 = scmp.lt.u32.totalorder %s283_s29, %s361_s4 }
 0x100   :  { %p289_p7 = pnand %p287_p6, %p284_p5 }
 0x102   :  { %292 = shalt.err (!%p289_p7)
}
 0x103   :  { %218 = dma.vmem_to_hbm [thread:$0]  %s216_s3, 16, %s361_s4, [#allocation3]  }
 0x104   :  { %293 = dma.done.wait [#allocation3], 16  }
 0x105   :  { %294 = vsyncadd [#allocation3], 4294967280 }
 0x106   :  { %222 = vsyncpa [#allocation3], 1 }

</bundles_post_ra>
